<compile_context>
chip_gen: v5e
topology: v5e:2x2
jax: 0.10.0
libtpu: 0.0.40
codegen_flags: <defaults>
</compile_context>

<pallas_src>
import functools

import jax
import jax.numpy as jnp
from jax.experimental import pallas as pl
from jax.experimental.pallas import tpu as pltpu


def _layernorm_kernel(x_ref, w_ref, b_ref, o_ref, *, eps):
    # x_ref: (TILE_ROWS, H); w_ref/b_ref: (1, H) float32.
    x = x_ref[...].astype(jnp.float32)
    inv_h = 1.0 / x.shape[-1]

    # Two-pass statistics (single load of x; tile is VMEM-resident, so the
    # second sweep is free under the HBM roofline) for exact parity with the
    # reference (x - u).pow(2).mean() formulation.
    mean = jnp.sum(x, axis=-1, keepdims=True) * inv_h
    d = x - mean
    var = jnp.sum(d * d, axis=-1, keepdims=True) * inv_h

    inv = jax.lax.rsqrt(var + eps)  # eps inside the sqrt (TF style), EUP op
    o_ref[...] = (w_ref[...] * (d * inv) + b_ref[...]).astype(o_ref.dtype)


def _vmem_capacity_bytes():
    try:
        return int(pltpu.get_tpu_info().vmem_capacity_bytes)
    except Exception:
        # Conservative fallback: assume the smallest generation (v7x, 64 MiB).
        return 64 * 1024 * 1024


def _choose_tile_rows(rows, hidden, in_bytes, out_bytes, vmem_capacity):
    # Lane-padded width Mosaic will actually allocate for a VMEM tile.
    hp = ((hidden + 127) // 128) * 128

    # Per-row resident bytes: double-buffered input + output pipeline tiles,
    # plus one f32 staging copy of the tile for the in-kernel intermediates
    # (matters when the I/O dtype is bf16 and on v7x's smaller VMEM).
    per_row = 2 * hp * in_bytes + 2 * hp * out_bytes + hp * 4

    # Generation-aware pipeline budget: ~1/4 of physical VMEM
    # (v7x 64 MiB -> 16 MiB; v5e/v6e 128 MiB -> 32 MiB).
    budget = max(8 * 1024 * 1024, min(48 * 1024 * 1024, vmem_capacity // 4))
    max_by_vmem = max(8, (budget // per_row) // 8 * 8)

    # Byte-targeted DMA size: ~6 MiB per input buffer keeps the ~0.35us
    # per-step overhead negligible even for small hidden sizes.
    target_bytes = 6 * 1024 * 1024
    target_rows = max(8, (target_bytes // max(1, hp * in_bytes)) // 8 * 8)

    tile = min(max_by_vmem, target_rows)

    # Keep >= 4 total grid steps when there is enough work, i.e. >= 2 steps
    # per TensorCore on v7x, so each core's DMA pipeline overlaps compute.
    if rows >= 32:
        quarter = max(8, ((rows // 4) // 8) * 8)
        tile = min(tile, quarter)

    # Never larger than the (8-rounded) row count.
    tile = min(tile, max(8, ((rows + 7) // 8) * 8))
    return max(8, tile)


def bert_layer_norm(x, weight, bias, *, eps=1e-12, tile_rows=None):
    """x: (..., hidden). weight, bias: (hidden,)."""
    orig_shape = x.shape
    hidden = orig_shape[-1]
    x2 = x.reshape(-1, hidden)
    rows = x2.shape[0]

    # Hoisted f32 upcast of weight/bias (done once here, not per grid step).
    w2 = weight.astype(jnp.float32).reshape(1, hidden)
    b2 = bias.astype(jnp.float32).reshape(1, hidden)

    in_bytes = jnp.dtype(x2.dtype).itemsize
    out_bytes = jnp.dtype(x.dtype).itemsize
    vmem_capacity = _vmem_capacity_bytes()
    if tile_rows is None:
        tile_rows = _choose_tile_rows(rows, hidden, in_bytes, out_bytes,
                                      vmem_capacity)

    # Ragged last block handled by Pallas: no row padding, no output slicing.
    grid = (pl.cdiv(rows, tile_rows),)
    kernel = functools.partial(_layernorm_kernel, eps=eps)

    # Generation-aware scoped-VMEM limit: ~3/4 of physical VMEM
    # (v7x -> 48 MiB, v5e/v6e -> 96 MiB).  Explicit so v5e's small scoped
    # default never silently caps the tiles.
    vmem_limit = int(min(96 * 1024 * 1024, vmem_capacity * 3 // 4))

    out = pl.pallas_call(
        kernel,
        out_shape=jax.ShapeDtypeStruct((rows, hidden), x.dtype),
        grid_spec=pltpu.PrefetchScalarGridSpec(
            num_scalar_prefetch=0,
            grid=grid,
            in_specs=[
                # Last dim = full hidden (legal even if hidden % 128 != 0).
                # TODO(synk): optionally sweep pipeline_mode=pl.Buffered(3)
                # for the large-hidden / small-tile regime.
                pl.BlockSpec((tile_rows, hidden), lambda i: (i, 0)),
                pl.BlockSpec((1, hidden), lambda i: (0, 0)),
                pl.BlockSpec((1, hidden), lambda i: (0, 0)),
            ],
            out_specs=pl.BlockSpec((tile_rows, hidden), lambda i: (i, 0)),
        ),
        compiler_params=pltpu.CompilerParams(
            dimension_semantics=("parallel",),
            vmem_limit_bytes=vmem_limit,
        ),
    )(x2, w2, b2)

    return out.reshape(orig_shape)


def _reference(x, weight, bias, eps=1e-12):
    x = x.astype(jnp.float32)
    u = jnp.mean(x, axis=-1, keepdims=True)
    s = jnp.mean((x - u) ** 2, axis=-1, keepdims=True)
    y = (x - u) / jnp.sqrt(s + eps)
    return weight.astype(jnp.float32) * y + bias.astype(jnp.float32)


if __name__ == "__main__":
    key = jax.random.PRNGKey(0)

    # --- Test 1: small f32, non-128 hidden, ragged-friendly path -----------
    batch, seq, hidden = 2, 8, 32
    x = jax.random.normal(key, (batch, seq, hidden), dtype=jnp.float32)
    weight = jnp.ones((hidden,), dtype=jnp.float32)   # matches nn.Parameter(ones)
    bias = jnp.zeros((hidden,), dtype=jnp.float32)    # matches nn.Parameter(zeros)

    out = jax.block_until_ready(bert_layer_norm(x, weight, bias))
    ref = _reference(x, weight, bias)
    assert out.shape == x.shape
    assert jnp.allclose(out, ref, atol=1e-5, rtol=1e-5)

    # --- Test 2: bf16, hidden % 128 == 0, multi-tile grid -------------------
    b2_, s2_, h2_ = 2, 72, 128                        # rows=144: ragged last block
    k2 = jax.random.PRNGKey(0)
    xb = jax.random.normal(k2, (b2_, s2_, h2_), dtype=jnp.float32).astype(jnp.bfloat16)
    wb = jnp.ones((h2_,), dtype=jnp.bfloat16)
    bb = jnp.zeros((h2_,), dtype=jnp.bfloat16)

    out_b = jax.block_until_ready(
        bert_layer_norm(xb, wb, bb, tile_rows=32))    # force a 5-step ragged grid
    ref_b = _reference(xb.astype(jnp.float32), wb, bb)
    assert out_b.shape == xb.shape
    assert jnp.allclose(out_b.astype(jnp.float32), ref_b, atol=3e-2, rtol=3e-2)

    print("KERNEL_OK")
</pallas_src>

<mosaic_0001>
module attributes {stable_mosaic.version = 11 : i64} {
  func.func @_layernorm_kernel(%arg0: i32, %arg1: memref<16x32xf32, #tpu.memory_space<vmem>>, %arg2: memref<1x32xf32, #tpu.memory_space<vmem>>, %arg3: memref<1x32xf32, #tpu.memory_space<vmem>>, %arg4: memref<16x32xf32, #tpu.memory_space<vmem>>) attributes {dimension_semantics = [#tpu.dimension_semantics<parallel>], iteration_bounds = array<i64: 1>, scalar_prefetch = 0 : i64, scratch_operands = 0 : i64, tpu.core_type = #tpu.core_type<tc>, window_params = [{transform_indices = @transform_0, window_bounds = array<i64: 16, 32>}, {pipeline_mode = #tpu.pipeline_mode<synchronous>, transform_indices = @transform_1, window_bounds = array<i64: 1, 32>}, {pipeline_mode = #tpu.pipeline_mode<synchronous>, transform_indices = @transform_2, window_bounds = array<i64: 1, 32>}, {transform_indices = @transform_3, window_bounds = array<i64: 16, 32>}]} {
    %c0 = arith.constant 0 : index
    %c0_0 = arith.constant 0 : index
    %0 = vector.load %arg1[%c0, %c0_0] : memref<16x32xf32, #tpu.memory_space<vmem>>, vector<16x32xf32>
    %cst = arith.constant dense<0.000000e+00> : vector<16xf32>
    %1 = vector.multi_reduction <add>, %0, %cst [1] : vector<16x32xf32> to vector<16xf32>
    %2 = vector.shape_cast %1 : vector<16xf32> to vector<16x1xf32>
    %cst_1 = arith.constant 3.125000e-02 : f32
    %3 = vector.broadcast %cst_1 : f32 to vector<16x1xf32>
    %4 = arith.mulf %2, %3 : vector<16x1xf32>
    %5 = vector.broadcast %4 : vector<16x1xf32> to vector<16x32xf32>
    %6 = arith.subf %0, %5 : vector<16x32xf32>
    %7 = arith.mulf %6, %6 : vector<16x32xf32>
    %cst_2 = arith.constant dense<0.000000e+00> : vector<16xf32>
    %8 = vector.multi_reduction <add>, %7, %cst_2 [1] : vector<16x32xf32> to vector<16xf32>
    %9 = vector.shape_cast %8 : vector<16xf32> to vector<16x1xf32>
    %cst_3 = arith.constant 3.125000e-02 : f32
    %10 = vector.broadcast %cst_3 : f32 to vector<16x1xf32>
    %11 = arith.mulf %9, %10 : vector<16x1xf32>
    %cst_4 = arith.constant 9.99999996E-13 : f32
    %12 = vector.broadcast %cst_4 : f32 to vector<16x1xf32>
    %13 = arith.addf %11, %12 : vector<16x1xf32>
    %14 = math.rsqrt %13 : vector<16x1xf32>
    %c0_5 = arith.constant 0 : index
    %c0_6 = arith.constant 0 : index
    %15 = vector.load %arg2[%c0_5, %c0_6] : memref<1x32xf32, #tpu.memory_space<vmem>>, vector<1x32xf32>
    %16 = vector.broadcast %14 : vector<16x1xf32> to vector<16x32xf32>
    %17 = arith.mulf %6, %16 : vector<16x32xf32>
    %18 = vector.broadcast %15 : vector<1x32xf32> to vector<16x32xf32>
    %19 = arith.mulf %18, %17 : vector<16x32xf32>
    %c0_7 = arith.constant 0 : index
    %c0_8 = arith.constant 0 : index
    %20 = vector.load %arg3[%c0_7, %c0_8] : memref<1x32xf32, #tpu.memory_space<vmem>>, vector<1x32xf32>
    %21 = vector.broadcast %20 : vector<1x32xf32> to vector<16x32xf32>
    %22 = arith.addf %19, %21 : vector<16x32xf32>
    %c0_9 = arith.constant 0 : index
    %c0_10 = arith.constant 0 : index
    %23 = vector.load %arg4[%c0_9, %c0_10] : memref<16x32xf32, #tpu.memory_space<vmem>>, vector<16x32xf32>
    tpu.vector_store %arg4[%c0_9, %c0_10], %22 {strides = array<i32>} : memref<16x32xf32, #tpu.memory_space<vmem>>, vector<16x32xf32>,
    return
  }
  func.func @transform_0(%arg0: i32) -> (i32, i32) {
    %c0_i32 = arith.constant 0 : i32
    %c0_i32_0 = arith.constant 0 : i32
    return %arg0, %c0_i32 : i32, i32
  }
  func.func @transform_1(%arg0: i32) -> (i32, i32) {
    %c0_i32 = arith.constant 0 : i32
    %c0_i32_0 = arith.constant 0 : i32
    %c0_i32_1 = arith.constant 0 : i32
    return %c0_i32, %c0_i32_0 : i32, i32
  }
  func.func @transform_2(%arg0: i32) -> (i32, i32) {
    %c0_i32 = arith.constant 0 : i32
    %c0_i32_0 = arith.constant 0 : i32
    %c0_i32_1 = arith.constant 0 : i32
    return %c0_i32, %c0_i32_0 : i32, i32
  }
  func.func @transform_3(%arg0: i32) -> (i32, i32) {
    %c0_i32 = arith.constant 0 : i32
    %c0_i32_0 = arith.constant 0 : i32
    return %arg0, %c0_i32 : i32, i32
  }
}

</mosaic_0001>

<bundles_post_ra>
// kernel: tpu_custom_call.1
= control target key start
LH: loop header
LB: loop body
LE: loop exit
PB: predicated region body
PF: predicated region fallthrough
CT: control target
= control target key end

     0   :  { %8 = vsyncpa [#allocation3], 0  ;;  %s264_s0 = inlined_call_operand.hbm [shape: f32[16,32], index: 0, kind: input, shape index: {}]   ;;  %s265_s1 = inlined_call_operand.hbm [shape: f32[1,32], index: 1, kind: input, shape index: {}]   ;;  %s266_s2 = inlined_call_operand.vmem [shape: f32[1,32], index: 2, kind: input, shape index: {}]   ;;  %s267_s3 = inlined_call_operand.hbm [shape: f32[16,32], index: 3, kind: output, shape index: {}]  }
   0x1   :  { %9 = vsyncpa [#allocation6], 0 }
   0x2   :  { %10 = vsyncpa [#allocation4], 0  ;;  %s15_s14 = sshll.u32 %s264_s0, 4  ;;  %s215_s15 = smov [#allocation2]   ;;  %s16_s14 = int_to_ptr.hbm [resolvable:$true] %s15_s14 }
   0x3   :  { %s17_s16 = sshll.u32 %s215_s15, 4  ;;  %s29_s19 = sshll.u32 %s265_s1, 4  ;;  %s18_s16 = int_to_ptr.vmem [resolvable:$true] %s17_s16  ;;  %s30_s19 = int_to_ptr.hbm [resolvable:$true] %s29_s19 }
   0x4   :  { %s216_s20 = smov 128   ;;  %s217_s21 = smov 8  }
   0x5   :  { %23 = dma.hbm_to_vmem [thread:$0]  %s16_s14, 256, %s18_s16, [#allocation3], %s216_s20, %s216_s20, %s217_s21  }
   0x6   :  { %s218_s22 = smov [#allocation5]  }
   0x7   :  { %s31_s23 = sshll.u32 %s218_s22, 4  ;;  %s32_s23 = int_to_ptr.vmem [resolvable:$true] %s31_s23 }
   0x8   :  { %34 = dma.hbm_to_vmem [thread:$0]  %s30_s19, 16, %s32_s23, [#allocation6]  }
   0x9   :  { %209 = dma.done.wait [#allocation3], 256  }
   0xa   :  { %210 = vsyncadd [#allocation3], 4294967040 }
   0xb   :  { %211 = dma.done.wait [#allocation6], 16  }
   0xc   :  { %212 = vsyncadd [#allocation6], 4294967280  ;;  %vm47_vm0 = vcmask 261120   ;;  %v45_v0 = vld [vmem:[#allocation2] sm:$0xff]  ;;  %v46_v2 = vld [vmem:[#allocation2 + $0x8] sm:$0xff]  ;;  %s219_s24 = smov [#allocation7]  }
   0xd   :  { %v48_v1 = vsel %vm47_vm0, %v45_v0, 0.0  ;;  %v51_v3 = vsel %vm47_vm0, %v46_v2, 0.0  ;;  %v131_v28 = vld [vmem:[#allocation5] ss:$0 sm:$0xff]  ;;  %v132_v32 = vld [vmem:[%s266_s2] ss:$0 sm:$0xff] }
   0xe   :  { %49 = vadd.xlane.f32.xlu0 %v48_v1  ;;  %s110_s25 = sshll.u32 %s219_s24, 4  ;;  %s112_s28 = sshll.u32 %s267_s3, 4  ;;  %s111_s25 = int_to_ptr.vmem [resolvable:$true] %s110_s25  ;;  %s113_s28 = int_to_ptr.hbm [resolvable:$true] %s112_s28 }
  0x16   :  { %52 = vadd.xlane.f32.xlu0 %v51_v3 }
  0x81   :  { %v50_v4 = vpop.xlane.xlu0 %49 }
  0x82   :  { %v54_v5 = vmul.f32 0.03125, %v50_v4 }
  0x84   :  { %v56_v6 = vsub.f32 %v45_v0, %v54_v5 }
  0x86   :  { %v58_v7 = vmul.f32 %v56_v6, %v56_v6 }
  0x88   :  { %v60_v8 = vsel %vm47_vm0, %v58_v7, 0.0 }
  0x89   :  { %61 = vadd.xlane.f32.xlu1 %v60_v8  ;;  %v53_v9 = vpop.xlane.xlu0 %52 }
  0x8a   :  { %v55_v10 = vmul.f32 0.03125, %v53_v9 }
  0x8c   :  { %v57_v11 = vsub.f32 %v46_v2, %v55_v10 }
  0x8e   :  { %v59_v12 = vmul.f32 %v57_v11, %v57_v11 }
  0x90   :  { %v63_v13 = vsel %vm47_vm0, %v59_v12, 0.0 }
  0x91   :  { %64 = vadd.xlane.f32.xlu1 %v63_v13 }
  0xfc   :  { %v62_v14 = vpop.xlane.xlu1 %61 }
  0xfd   :  { %v66_v15 = vmul.f32 0.03125, %v62_v14 }
  0xff   :  { %v68_v16 = vadd.f32 1e-12, %v66_v15 }
 0x101   :  { %133 = vrsqrt.f32 %v68_v16  ;;  %vm76_vm2 = vweird.f32 %v68_v16 }
 0x104   :  { %v65_v17 = vpop.xlane.xlu1 %64 }
 0x105   :  { %v67_v18 = vmul.f32 0.03125, %v65_v17 }
 0x107   :  { %v134_v19 = vpop.eup %133  ;;  %v69_v20 = vadd.f32 1e-12, %v67_v18 }
 0x108   :  { %v71_v21 = vmul.f32 %v134_v19, %v68_v16  ;;  %vm77_vm1 = vweird.f32 %v134_v19 }
 0x109   :  { %135 = vrsqrt.f32 %v69_v20  ;;  %vm78_vm3 = vmor %vm76_vm2, %vm77_vm1  ;;  %vm86_vm5 = vweird.f32 %v69_v20 }
 0x10a   :  { %v72_v22 = vmul.f32 %v134_v19, %v71_v21 }
 0x10c   :  { %v73_v23 = vmul.f32 0.5, %v72_v22 }
 0x10e   :  { %v74_v24 = vsub.f32 1.5, %v73_v23 }
 0x10f   :  { %v136_v25 = vpop.eup %135 }
 0x110   :  { %v75_v26 = vmul.f32 %v134_v19, %v74_v24  ;;  %v81_v27 = vmul.f32 %v136_v25, %v69_v20  ;;  %vm87_vm4 = vweird.f32 %v136_v25 }
 0x111   :  { %vm88_vm6 = vmor %vm86_vm5, %vm87_vm4 }
 0x112   :  { %v79_v29 = vsel %vm78_vm3, %v134_v19, %v75_v26  ;;  %v82_v30 = vmul.f32 %v136_v25, %v81_v27 }
 0x113   :  { %v91_v31 = vmul.f32 %v79_v29, %v56_v6 }
 0x114   :  { %v83_v33 = vmul.f32 0.5, %v82_v30 }
 0x115   :  { %v96_v34 = vmul.f32 %v131_v28, %v91_v31 }
 0x116   :  { %v84_v35 = vsub.f32 1.5, %v83_v33 }
 0x117   :  { %v102_v36 = vadd.f32 %v132_v32, %v96_v34 }
 0x118   :  { %v85_v37 = vmul.f32 %v136_v25, %v84_v35 }
 0x119   :  { %104 = vst.msk [vmem:[#allocation7] sm:$0xff] %vm47_vm0, %v102_v36 }
 0x11a   :  { %v89_v38 = vsel %vm88_vm6, %v136_v25, %v85_v37 }
 0x11b   :  { %v92_v39 = vmul.f32 %v89_v38, %v57_v11 }
 0x11d   :  { %v97_v40 = vmul.f32 %v131_v28, %v92_v39 }
 0x11f   :  { %v103_v41 = vadd.f32 %v132_v32, %v97_v40 }
 0x121   :  { %105 = vst.msk [vmem:[#allocation7 + $0x8] sm:$0xff] %vm47_vm0, %v103_v41 }
 0x122   :  { %118 = dma.vmem_to_hbm [thread:$0]  %s111_s25, 256, %s113_s28, [#allocation4], %s216_s20, %s216_s20, %s217_s21  }
 0x123   :  { %213 = dma.done.wait [#allocation4], 256  }
 0x124   :  { %214 = vsyncadd [#allocation4], 4294967040 }
 0x125   :  { %123 = vsyncpa [#allocation3], 1 }
 0x126   :  { %124 = vsyncpa [#allocation6], 1 }
 0x127   :  { %125 = vsyncpa [#allocation4], 1 }

</bundles_post_ra>
